<compile_context>
chip_gen: v7x
topology: tpu7x:2x2x1
jax: 0.10.0
libtpu: 0.0.40
codegen_flags: <defaults>
</compile_context>

<pallas_src>
import math
import functools

import jax
import jax.numpy as jnp
from jax import lax
from jax.experimental import pallas as pl
from jax.experimental.pallas import tpu as pltpu

PAD_IDX = 1  # fairseq Dictionary default padding index


def _round_up(x, m):
    return (x + m - 1) // m * m


# --------------------------------------------------------------------------
# Path A: small vocab -> VMEM-resident table + one-hot MXU lookup.
# --------------------------------------------------------------------------
def _prenet_onehot_kernel(scales_ref,   # SMEM f32[2]          [emb_scale, pe_scale]
                          tok_ref,      # VMEM i32[1, tt, 1]
                          emb_ref,      # VMEM [v_pad, D]       whole table, resident
                          pe_ref,       # VMEM [tt, D]
                          out_ref,      # VMEM [1, tt, D]
                          *, tile_t, v_pad):
    tok = tok_ref[0]                                               # (tt, 1)
    vocab_ids = lax.broadcasted_iota(jnp.int32, (tile_t, v_pad), 1)
    onehot = (vocab_ids == tok).astype(emb_ref.dtype)              # (tt, v_pad)
    prec = lax.Precision.HIGHEST if emb_ref.dtype == jnp.float32 else None
    emb = jnp.dot(onehot, emb_ref[...],
                  preferred_element_type=jnp.float32, precision=prec)
    # TODO(synk): positional dropout omitted -- identity in eval mode.
    x = scales_ref[0] * emb + scales_ref[1] * pe_ref[...]
    out_ref[0] = x.astype(out_ref.dtype)


# --------------------------------------------------------------------------
# Path B: large vocab -> HBM row gather, double-buffered across grid steps.
# --------------------------------------------------------------------------
def _prenet_gather_kernel(tok_ref,      # SMEM i32[B * t_pad]  (scalar prefetch, flat)
                          scales_ref,   # SMEM f32[2]
                          emb_hbm,      # ANY  [V, D]           table stays in HBM
                          pe_ref,       # VMEM [tt, D]
                          out_ref,      # VMEM [1, tt, D]
                          gather_buf,   # VMEM [2, tt, D]       double buffer
                          sems,         # DMA semaphores (2,)   one per slot
                          *, tile_t, t_pad, unroll):
    t = pl.program_id(0)
    b = pl.program_id(1)
    nb = pl.num_programs(1)
    n_steps = pl.num_programs(0) * nb
    step = t * nb + b
    slot = step % 2

    # Invariant: every copy into a given slot is one (1, D) row of identical
    # byte count, so tile_t same-size waits on that slot's semaphore drain
    # exactly one issued batch.
    def issue(tile_idx, batch_idx, s):
        buf = gather_buf.at[s]
        sem = sems.at[s]
        base = batch_idx * t_pad + tile_idx * tile_t

        @pl.loop(0, tile_t // unroll)
        def _(c):
            r0 = c * unroll
            for u in range(unroll):                  # partial unroll
                r = r0 + u
                tok = tok_ref[base + r]
                pltpu.make_async_copy(emb_hbm.at[pl.ds(tok, 1), :],
                                      buf.at[pl.ds(r, 1), :],
                                      sem).start()

    def drain(s):
        buf = gather_buf.at[s]
        sem = sems.at[s]

        @pl.loop(0, tile_t // unroll)
        def _(c):
            r0 = c * unroll
            for u in range(unroll):
                # Static descriptor: only size + semaphore matter for the wait,
                # so no SMEM token re-read after .wait().
                pltpu.make_async_copy(emb_hbm.at[pl.ds(0, 1), :],
                                      buf.at[pl.ds(r0 + u, 1), :],
                                      sem).wait()

    # Prime the pipeline on the very first grid step.
    @pl.when(step == 0)
    def _():
        issue(t, b, slot)

    # Prefetch the next tile's rows into the other slot (cross-step overlap).
    @pl.when(step < n_steps - 1)
    def _():
        nxt_b = jnp.where(b + 1 < nb, b + 1, 0)
        nxt_t = jnp.where(b + 1 < nb, t, t + 1)
        issue(nxt_t, nxt_b, 1 - slot)

    drain(slot)

    # TODO(synk): positional dropout omitted -- identity in eval mode.
    x = (scales_ref[0] * gather_buf[slot].astype(jnp.float32)
         + scales_ref[1] * pe_ref[...])
    out_ref[0] = x.astype(out_ref.dtype)


# --------------------------------------------------------------------------
# Wrapper
# --------------------------------------------------------------------------
def make_sinusoidal_pe(max_len, d_model):
    position = jnp.arange(max_len, dtype=jnp.float32)[:, None]
    div_term = jnp.exp(jnp.arange(0, d_model, 2, dtype=jnp.float32)
                       * -(math.log(10000.0) / d_model))
    pe = jnp.zeros((max_len, d_model), dtype=jnp.float32)
    pe = pe.at[:, 0::2].set(jnp.sin(position * div_term))
    pe = pe.at[:, 1::2].set(jnp.cos(position * div_term))
    return pe


def _vmem_limit(need_bytes):
    return int(min(max(2 * need_bytes + (4 << 20), 32 << 20), 64 << 20))


def text_encoder_prenet(src_tokens, embed_weight, pe_table, alpha, *,
                        use_scaled_pos_enc=True, pad_idx=PAD_IDX,
                        tile_t=256, out_dtype=jnp.float32,
                        use_gather=None, vmem_table_limit_bytes=8 << 20):
    """Returns (encoder_prenet(src_tokens), src_tokens.eq(padding_idx))."""
    B, T = src_tokens.shape
    V, D = embed_weight.shape
    if pe_table.shape[0] < T:
        raise ValueError(f"pe_table has only {pe_table.shape[0]} positions "
                         f"but T={T}; increase max_text_positions")

    # Positional-encoding scales: Scaled -> x + alpha*pe; plain -> sqrt(D)*x + pe.
    if use_scaled_pos_enc:
        scales = jnp.stack([jnp.asarray(1.0, jnp.float32),
                            jnp.asarray(alpha, jnp.float32)])
    else:
        scales = jnp.stack([jnp.asarray(math.sqrt(D), jnp.float32),
                            jnp.asarray(1.0, jnp.float32)])

    # Time-axis tiling: sublane-aligned, padded so it divides evenly.
    tt = max(8, min(tile_t, _round_up(T, 8)))
    tt = _round_up(tt, 8)
    t_pad = _round_up(T, tt)
    n_t = t_pad // tt

    tok = src_tokens.astype(jnp.int32)
    if t_pad != T:
        # Padded rows look up the (valid) pad row; they are sliced off below.
        tok = jnp.pad(tok, ((0, 0), (0, t_pad - T)), constant_values=pad_idx)

    pe = pe_table[:T].astype(jnp.float32)
    if t_pad != T:
        pe = jnp.pad(pe, ((0, t_pad - T), (0, 0)))

    table_bytes = V * D * embed_weight.dtype.itemsize
    if use_gather is None:
        use_gather = table_bytes > vmem_table_limit_bytes

    out_itemsize = jnp.dtype(out_dtype).itemsize

    if not use_gather:
        # -------- one-hot / VMEM-resident table path (SpeechT5 text vocab) --
        v_pad = _round_up(V, 128)
        emb = embed_weight
        if v_pad != V:
            emb = jnp.pad(emb, ((0, v_pad - V), (0, 0)))
        tok3d = tok[..., None]                                   # (B, t_pad, 1)

        need = (v_pad * D * emb.dtype.itemsize
                + 2 * tt * D * 4                     # pe (double-buffered)
                + 2 * tt * 4                         # tokens
                + 2 * tt * D * out_itemsize          # output
                + tt * (v_pad + D) * 4)              # onehot / matmul temporaries

        out = pl.pallas_call(
            functools.partial(_prenet_onehot_kernel, tile_t=tt, v_pad=v_pad),
            out_shape=jax.ShapeDtypeStruct((B, t_pad, D), out_dtype),
            grid_spec=pltpu.PrefetchScalarGridSpec(
                num_scalar_prefetch=0,
                grid=(n_t, B),                                   # batch innermost
                in_specs=[
                    pl.BlockSpec(memory_space=pltpu.MemorySpace.SMEM),  # scales
                    pl.BlockSpec((1, tt, 1), lambda t, b: (b, t, 0)),   # tokens
                    pl.BlockSpec((v_pad, D), lambda t, b: (0, 0)),      # table (resident)
                    pl.BlockSpec((tt, D), lambda t, b: (t, 0)),         # pe tile
                ],
                out_specs=pl.BlockSpec((1, tt, D), lambda t, b: (b, t, 0)),
            ),
            compiler_params=pltpu.CompilerParams(
                dimension_semantics=("parallel", "parallel"),
                vmem_limit_bytes=_vmem_limit(need)),
        )(scales, tok3d, emb, pe)
    else:
        # -------- large-vocab HBM row-gather path ---------------------------
        unroll = 8                                   # tt is a multiple of 8
        tok_flat = tok.reshape(-1)                   # (B * t_pad,) -> SMEM, flat

        need = (2 * tt * D * embed_weight.dtype.itemsize   # gather double buffer
                + 2 * tt * D * 4                           # pe
                + 2 * tt * D * out_itemsize                # output
                + tt * D * 4)                              # compute temporaries

        out = pl.pallas_call(
            functools.partial(_prenet_gather_kernel, tile_t=tt, t_pad=t_pad,
                              unroll=unroll),
            out_shape=jax.ShapeDtypeStruct((B, t_pad, D), out_dtype),
            grid_spec=pltpu.PrefetchScalarGridSpec(
                num_scalar_prefetch=1,                       # tokens -> SMEM
                grid=(n_t, B),                               # batch innermost
                in_specs=[
                    pl.BlockSpec(memory_space=pltpu.MemorySpace.SMEM),   # scales
                    pl.BlockSpec(memory_space=pl.ANY),                   # table (HBM)
                    pl.BlockSpec((tt, D), lambda t, b, tok: (t, 0)),     # pe tile
                ],
                out_specs=pl.BlockSpec((1, tt, D), lambda t, b, tok: (b, t, 0)),
                scratch_shapes=[
                    pltpu.VMEM((2, tt, D), embed_weight.dtype),          # double buffer
                    pltpu.SemaphoreType.DMA((2,)),                       # per-slot sems
                ],
            ),
            compiler_params=pltpu.CompilerParams(
                # Cross-step double buffering relies on sequential grid order,
                # so do not let megacore split this grid.
                dimension_semantics=("arbitrary", "arbitrary"),
                vmem_limit_bytes=_vmem_limit(need)),
        )(tok_flat, scales, embed_weight, pe)

    out = out[:, :T, :]
    # Padding mask computed outside the kernel (avoids a last-dim-1 output).
    pad_mask = src_tokens == pad_idx
    return out, pad_mask


# --------------------------------------------------------------------------
# Self-test
# --------------------------------------------------------------------------
def _run_and_check(B, T, V, D, max_len, alpha, use_scaled, key, *,
                   tile_t=256, use_gather=None):
    k_emb, k_tok = jax.random.split(key)

    # nn.Embedding(V, D, padding_idx=PAD_IDX): normal init, padding row zeroed.
    embed_weight = jax.random.normal(k_emb, (V, D), jnp.float32) * (D ** -0.5)
    embed_weight = embed_weight.at[PAD_IDX].set(0.0)
    pe_table = make_sinusoidal_pe(max_len, D)

    src_tokens = jax.random.randint(k_tok, (B, T), 2, V, dtype=jnp.int32)
    src_tokens = src_tokens.at[-1, -3:].set(PAD_IDX)   # right-padding, last row

    out, pad_mask = text_encoder_prenet(
        src_tokens, embed_weight, pe_table, alpha,
        use_scaled_pos_enc=use_scaled, pad_idx=PAD_IDX,
        tile_t=tile_t, use_gather=use_gather)
    out = jax.block_until_ready(out)
    pad_mask = jax.block_until_ready(pad_mask)

    # Pure-JAX reference.
    ref_emb = embed_weight[src_tokens]
    if use_scaled:
        ref_out = ref_emb + alpha * pe_table[:T][None]
    else:
        ref_out = ref_emb * math.sqrt(D) + pe_table[:T][None]
    ref_mask = src_tokens == PAD_IDX

    assert out.shape == (B, T, D) and out.dtype == jnp.float32
    assert pad_mask.shape == (B, T) and pad_mask.dtype == jnp.bool_
    assert jnp.allclose(out, ref_out, atol=1e-5, rtol=1e-5), float(
        jnp.max(jnp.abs(out - ref_out)))
    assert jnp.array_equal(pad_mask, ref_mask)


if __name__ == "__main__":
    key = jax.random.PRNGKey(0)
    k1, k2, k3 = jax.random.split(key, 3)

    # 1) One-hot / VMEM-table path, single tile, ScaledPositionalEncoding.
    _run_and_check(B=2, T=8, V=64, D=128, max_len=64,
                   alpha=1.5, use_scaled=True, key=k1)
    # 2) One-hot path, multi-tile / padded-T, plain PositionalEncoding (sqrt(D)).
    _run_and_check(B=2, T=200, V=64, D=128, max_len=256,
                   alpha=1.0, use_scaled=False, key=k2, tile_t=64)
    # 3) Large-vocab DMA-gather path (forced), cross-step double buffering.
    _run_and_check(B=2, T=200, V=64, D=128, max_len=256,
                   alpha=0.7, use_scaled=True, key=k3, tile_t=64,
                   use_gather=True)

    print("KERNEL_OK")
</pallas_src>

<mosaic_0001>
module attributes {stable_mosaic.version = 11 : i64} {
  func.func @_prenet_onehot_kernel(%arg0: i32, %arg1: i32, %arg2: memref<2xf32, #tpu.memory_space<smem>>, %arg3: memref<1x8x1xi32, #tpu.memory_space<vmem>>, %arg4: memref<128x128xf32, #tpu.memory_space<vmem>>, %arg5: memref<8x128xf32, #tpu.memory_space<vmem>>, %arg6: memref<1x8x128xf32, #tpu.memory_space<vmem>>) attributes {dimension_semantics = [#tpu.dimension_semantics<parallel>, #tpu.dimension_semantics<parallel>], iteration_bounds = array<i64: 1, 2>, scalar_prefetch = 0 : i64, scratch_operands = 0 : i64, tpu.core_type = #tpu.core_type<tc>, window_params = [{transform_indices = @transform_0, window_bounds = array<i64: 2>}, {transform_indices = @transform_1, window_bounds = array<i64: 1, 8, 1>}, {pipeline_mode = #tpu.pipeline_mode<synchronous>, transform_indices = @transform_2, window_bounds = array<i64: 128, 128>}, {transform_indices = @transform_3, window_bounds = array<i64: 8, 128>}, {transform_indices = @transform_4, window_bounds = array<i64: 1, 8, 128>}]} {
    %c0 = arith.constant 0 : index
    %c0_0 = arith.constant 0 : index
    %c0_1 = arith.constant 0 : index
    %0 = vector.load %arg3[%c0, %c0_0, %c0_1] : memref<1x8x1xi32, #tpu.memory_space<vmem>>, vector<1x8x1xi32>
    %1 = vector.shape_cast %0 : vector<1x8x1xi32> to vector<8x1xi32>
    %2 = tpu.iota {dimensions = array<i32: 1>} : vector<8x128xi32>
    %3 = vector.broadcast %1 : vector<8x1xi32> to vector<8x128xi32>
    %4 = arith.cmpi eq, %2, %3 : vector<8x128xi32>
    %5 = arith.extui %4 : vector<8x128xi1> to vector<8x128xi32>
    %6 = arith.sitofp %5 : vector<8x128xi32> to vector<8x128xf32>
    %c0_2 = arith.constant 0 : index
    %c0_3 = arith.constant 0 : index
    %7 = vector.load %arg4[%c0_2, %c0_3] : memref<128x128xf32, #tpu.memory_space<vmem>>, vector<128x128xf32>
    %cst = arith.constant dense<0.000000e+00> : vector<8x128xf32>
    %8 = tpu.matmul %6, %7, %cst {dimension_numbers = #tpu.dot_dimension_numbers<[1], [0], [0], [1], [0, 0, 1, 1], [], []>, precision = #tpu.contract_precision<fp32>} : vector<8x128xf32>, vector<128x128xf32>, vector<8x128xf32> -> vector<8x128xf32>
    %c0_4 = arith.constant 0 : index
    %9 = memref.load %arg2[%c0_4] : memref<2xf32, #tpu.memory_space<smem>>
    %10 = vector.broadcast %9 : f32 to vector<8x128xf32>
    %11 = arith.mulf %10, %8 : vector<8x128xf32>
    %c1 = arith.constant 1 : index
    %12 = memref.load %arg2[%c1] : memref<2xf32, #tpu.memory_space<smem>>
    %c0_5 = arith.constant 0 : index
    %c0_6 = arith.constant 0 : index
    %13 = vector.load %arg5[%c0_5, %c0_6] : memref<8x128xf32, #tpu.memory_space<vmem>>, vector<8x128xf32>
    %14 = vector.broadcast %12 : f32 to vector<8x128xf32>
    %15 = arith.mulf %14, %13 : vector<8x128xf32>
    %16 = arith.addf %11, %15 : vector<8x128xf32>
    %c0_7 = arith.constant 0 : index
    %c0_8 = arith.constant 0 : index
    %c0_9 = arith.constant 0 : index
    %17 = vector.load %arg6[%c0_7, %c0_8, %c0_9] : memref<1x8x128xf32, #tpu.memory_space<vmem>>, vector<1x8x128xf32>
    %18 = vector.shape_cast %17 : vector<1x8x128xf32> to vector<8x128xf32>
    %19 = vector.shape_cast %16 : vector<8x128xf32> to vector<1x8x128xf32>
    tpu.vector_store %arg6[%c0_7, %c0_8, %c0_9], %19 {strides = array<i32>} : memref<1x8x128xf32, #tpu.memory_space<vmem>>, vector<1x8x128xf32>,
    return
  }
  func.func @transform_0(%arg0: i32, %arg1: i32) -> i32 {
    %c0_i32 = arith.constant 0 : i32
    %c0_i32_0 = arith.constant 0 : i32
    return %c0_i32 : i32
  }
  func.func @transform_1(%arg0: i32, %arg1: i32) -> (i32, i32, i32) {
    %c0_i32 = arith.constant 0 : i32
    %c0_i32_0 = arith.constant 0 : i32
    return %arg1, %arg0, %c0_i32 : i32, i32, i32
  }
  func.func @transform_2(%arg0: i32, %arg1: i32) -> (i32, i32) {
    %c0_i32 = arith.constant 0 : i32
    %c0_i32_0 = arith.constant 0 : i32
    %c0_i32_1 = arith.constant 0 : i32
    return %c0_i32, %c0_i32_0 : i32, i32
  }
  func.func @transform_3(%arg0: i32, %arg1: i32) -> (i32, i32) {
    %c0_i32 = arith.constant 0 : i32
    %c0_i32_0 = arith.constant 0 : i32
    return %arg0, %c0_i32 : i32, i32
  }
  func.func @transform_4(%arg0: i32, %arg1: i32) -> (i32, i32, i32) {
    %c0_i32 = arith.constant 0 : i32
    %c0_i32_0 = arith.constant 0 : i32
    return %arg1, %arg0, %c0_i32 : i32, i32, i32
  }
}

</mosaic_0001>

<bundles_post_ra>
// kernel: tpu_custom_call.1
= control target key start
LH: loop header
LB: loop body
LE: loop exit
PB: predicated region body
PF: predicated region fallthrough
CT: control target
= control target key end

     0   :  { %9 = vsyncpa [#allocation5], 0  ;;  %s2282_s0 = inlined_call_operand.vmem [shape: f32[2], index: 0, kind: input, shape index: {}]   ;;  %s2283_s1 = inlined_call_operand.vmem [shape: s32[2,8,1], index: 1, kind: input, shape index: {}]   ;;  %s2284_s2 = inlined_call_operand.hbm [shape: f32[128,128], index: 2, kind: input, shape index: {}]   ;;  %s2285_s3 = inlined_call_operand.vmem [shape: f32[8,128], index: 3, kind: input, shape index: {}]   ;;  %s2286_s4 = inlined_call_operand.hbm [shape: f32[2,8,128], index: 4, kind: output, shape index: {}]  }
   0x1   :  { %10 = vsyncpa [#allocation3], 0 }
   0x2   :  { %11 = vsyncpa [#allocation4], 0 }
   0x3   :  { %13 = vsyncpa [#allocation4 + $0x1], 0  ;;  %s1800_s15 = smov 0   ;;  %s1802_s16 = smov 0  }
   0x4   :  { %s1804_s17 = smov 0   ;;  %s1806_s18 = smov 0  }
   0x5   :  { %s1808_s19 = smov 0   ;;  %s1810_s20 = smov 0  }
   0x6 LB: > { %s1064_s21 = sadd.s32 4294967295, %s1763_s20   ;;  %s1065_s22 = sadd.s32 4294967294, %s1763_s20   ;;  %s1763_s20 = sphi %s1810_s20, %s19_s20   ;;  %s1759_s19 = sphi %s1808_s19, %s2299_s19   ;;  %s1755_s18 = sphi %s1806_s18, %s2298_s18   ;;  %s1751_s17 = sphi %s1804_s17, %s2297_s17   ;;  %s1747_s16 = sphi %s1802_s16, %s2296_s16   ;;  %s1743_s15 = sphi %s1800_s15, %s2295_s15  }
   0x7   : > { %s28_s23 = sadd.s32 1, %s1759_s19  ;;  %s136_s24 = sadd.s32 1, %s1751_s17 }
   0x8   : > { %p29_p0 = scmp.ge.s32.totalorder %s28_s23, 2  ;;  %p146_p1 = scmp.ne.s32.totalorder %s1751_s17, %s1747_s16 }
   0x9   : > { %p147_p2 = scmp.eq.s32.totalorder %s1064_s21, 1  ;;  %p152_p3 = scmp.ne.s32.totalorder %s1747_s16, %s1743_s15 }
   0xa   : > { %s2301_s23 = smov (%p29_p0, %s28_s23), 0  ;;  %p153_p5 = scmp.eq.s32.totalorder %s1065_s22, 1 }
   0xb   : > { %p1840_p4 = por %p147_p2, %p146_p1  ;;  %s131_s26 = ssub.s32 %s1759_s19, %s2301_s23 }
   0xc   : > { %p1066_p6 = scmp.ge.s32.totalorder %s1763_s20, 1  ;;  %p134_p7 = scmp.eq.s32.totalorder %s131_s26, 0 }
   0xd   : > { %s2288_s25 = scalar_select %p1840_p4, 1, 0 }
   0xe   : > { %p1847_p8 = por %p153_p5, %p152_p3  ;;  %p160_p9 = scmp.lt.s32.totalorder %s1763_s20, 3 }
   0xf   : > { %s1853_s28 = scalar_select %p134_p7, %s1751_s17, %s136_s24  }
  0x10   : > { %s2289_s27 = scalar_select %p1847_p8, 1, 0 }
  0x11   : > { %p1855_p10 = pnand %p1066_p6, %p160_p9  ;;  %p1859_p11 = scmp.eq.s32.totalorder %s1064_s21, 0 }
  0x12   : > { %s173_s7 = sshll.u32 %s2282_s0, 4  ;;  %s1765_s9 = smov [#allocation6]   ;;  %s174_s7 = int_to_ptr.vmem [resolvable:$true] %s173_s7 }
  0x13   : > { %p1560_p12 = pneg %p1855_p10  ;;  %s183_s10 = sshll.u32 %s1765_s9, 4  ;;  %s1874_s10 = int_to_ptr.vmem [resolvable:$true] %s183_s10 }
  0x14   : > { %s1634_s11 = scalar_lea.vmem %s174_s7, 16  ;;  %p1642_p5 = scmp.lt.s32.totalorder %s174_s7, %s174_s7 }
  0x15   : > { %p1870_p13 = pnand %p1859_p11, %p1560_p12  ;;  %p1635_p0 = scmp.ne.s32.totalorder %s174_s7, %s1634_s11 }
  0x16   : > { %p1643_p6 = scmp.lt.s32.totalorder %s1634_s11, %s1634_s11 }
  0x17   : > { %p1636_p1 = pneg %p1870_p13 }
  0x18   : > { %p1644_p7 = por %p1643_p6, %p1642_p5 }
  0x19   : > { %p1637_p2 = pnand %p1636_p1, %p1635_p0 }
  0x1b   : > { %p1638_p3 = pneg %p1637_p2 }
  0x1d   : > { %p1645_p9 = pnand %p1644_p7, %p1638_p3 }
  0x1f   : > { %1648 = shalt.err (!%p1645_p9)
}
  0x20   : > { %s1766_s12 = smov [#allocation2]   ;;  %s1649_s21 = scalar_lea.hbm %s2284_s2, 2048 }
  0x21   : > { %1563 = dma.vmem_to_smem (!%p1870_p13), %s174_s7, 16, %s1766_s12, [#allocation5]  }
  0x22   : > { %p1650_p12 = scmp.ne.s32.totalorder %s2284_s2, %s1649_s21  ;;  %p1656_p3 = scmp.lt.u32.totalorder %s1649_s21, %s2284_s2 }
  0x24   : > { %p1652_p0 = pnand %p1650_p12, %p1636_p1 }
  0x26   : > { %p1653_p2 = pneg %p1652_p0 }
  0x28   : > { %p1658_p5 = pnand %p1656_p3, %p1653_p2 }
  0x2a   : > { %1661 = shalt.err (!%p1658_p5)
}
  0x2b   : > { %s1662_s6 = scalar_lea.vmem %s1874_s10, 2048  ;;  %p1670_p8 = scmp.lt.s32.totalorder %s1874_s10, %s1874_s10 }
  0x2c   : > { %p1663_p6 = scmp.ne.s32.totalorder %s1874_s10, %s1662_s6  ;;  %p1671_p12 = scmp.lt.s32.totalorder %s1662_s6, %s1662_s6 }
  0x2e   : > { %p1665_p7 = pnand %p1663_p6, %p1636_p1  ;;  %p1672_p0 = por %p1671_p12, %p1670_p8 }
  0x30   : > { %p1666_p9 = pneg %p1665_p7 }
  0x32   : > { %p1673_p4 = pnand %p1672_p0, %p1666_p9 }
  0x34   : > { %1676 = shalt.err (!%p1673_p4)
}
  0x35   : > { %s1767_s7 = smov 128   ;;  %s1768_s9 = smov 8  }
  0x36   : > { %1566 = dma.hbm_to_vmem [thread:$0]  (!%p1870_p13), %s2284_s2, 2048, %s1874_s10, [#allocation3], %s1767_s7, %s1767_s7, %s1768_s9  }
  0x37   : > { %216 = sbr.rel (%p1855_p10) target bundleno = 508 (0x1fc), region = 36 }
  0x3e   : > { %1730 = dma.done.wait (%p1859_p11), [#allocation5], 16  }
  0x3f   : > { %1732 = vsyncadd (%p1859_p11), [#allocation5], 4294967280 }
  0x40   : > { %1734 = dma.done.wait (%p1859_p11), [#allocation3], 2048  }
  0x41   : > { %1736 = vsyncadd (%p1859_p11), [#allocation3], 4294965248 }
  0x42   : > { %226 = sfence }
  0x43   : > { %p253_p4 = scmp.lt.s32.totalorder %s1755_s18, 1  ;;  %v273_v0 = vld [vmem:[#allocation6] sm:$0xff]  ;;  %v274_v1 = vld [vmem:[#allocation6 + $0x8] sm:$0xff]  ;;  %v275_v2 = vld [vmem:[#allocation6 + $0x10] sm:$0xff]  ;;  %v1769_v3 = vmov 0   ;;  %v1770_v4 = vmov 0.0|0.0  }
  0x44   : > { %1633 = vset.pattern.permute.xlu0 %v1769_v3  ;;  %1469 = vmatprep.subr.bf16.mxu0 %v1770_v4  ;;  %v290_v5 = vand.u32 4294901760, %v273_v0  ;;  %v293_v6 = vand.u32 4294901760, %v274_v1  ;;  %v276_v7 = vld [vmem:[#allocation6 + $0x18] sm:$0xff]  ;;  %v296_v8 = vand.u32 4294901760, %v275_v2  ;;  %v277_v9 = vld [vmem:[#allocation6 + $0x20] sm:$0xff]  ;;  %v278_v10 = vld [vmem:[#allocation6 + $0x28] sm:$0xff] }
  0x45   : > { %s254_s29 = scalar_select %p253_p4, %s1755_s18, 1  ;;  %1397 = vmatprep.subr.bf16.mxu1 %v1770_v4  ;;  %v299_v11 = vand.u32 4294901760, %v276_v7  ;;  %v302_v12 = vand.u32 4294901760, %v277_v9  ;;  %v305_v13 = vand.u32 4294901760, %v278_v10  ;;  %v279_v14 = vld [vmem:[#allocation6 + $0x30] sm:$0xff]  ;;  %v280_v15 = vld [vmem:[#allocation6 + $0x38] sm:$0xff] }
  0x46   : > { %v1924_v16 = vpack.c.bf16 %v293_v6, %v290_v5  ;;  %v1926_v17 = vsub.f32 %v273_v0, %v290_v5  ;;  %v1928_v18 = vsub.f32 %v274_v1, %v293_v6  ;;  %v1930_v19 = vsub.f32 %v275_v2, %v296_v8  ;;  %v1932_v20 = vld [vmem:[#allocation6 + $0x40] sm:$0xff]  ;;  %v1934_v21 = vld [vmem:[#allocation6 + $0x48] sm:$0xff]  ;;  %v1936_v22 = vld [vmem:[#allocation6 + $0x50] sm:$0xff]  ;;  %s1080_s14 = sld [smem:[#allocation2 + $0x1]]  ;;  %s930_s21 = sld [smem:[#allocation2]] }
  0x47   : > { %s1075_s30 = sshll.u32 %s254_s29, 3  ;;  %v1938_v23 = vpack.c.bf16 %v299_v11, %v296_v8  ;;  %v1940_v24 = vsub.f32 %v276_v7, %v299_v11  ;;  %v1942_v25 = vsub.f32 %v277_v9, %v302_v12  ;;  %v1944_v26 = vld [vmem:[#allocation6 + $0x58] sm:$0xff]  ;;  %v1946_v27 = vld [vmem:[#allocation6 + $0x60] sm:$0xff]  ;;  %v1953_v28 = vsub.f32 %v278_v10, %v305_v13  ;;  %v1961_v36 = vld [vmem:[#allocation6 + $0x68] sm:$0xff]  ;;  %s250_s22 = sand.u32 1, %s1747_s16  }
  0x48   : > { %s259_s13 = scalar_lea.vmem %s2283_s1, %s1075_s30  ;;  %1471 = vmatpush3.bf16.msra.mxu0 %v1924_v16  ;;  %1399 = vmatpush3.bf16.msra.mxu1 %v1924_v16  ;;  %v308_v29 = vand.u32 4294901760, %v279_v14  ;;  %v311_v30 = vand.u32 4294901760, %v280_v15  ;;  %v314_v31 = vand.u32 4294901760, %v1932_v20  ;;  %v317_v33 = vand.u32 4294901760, %v1934_v21  ;;  %v1971_v41 = vld [vmem:[#allocation6 + $0x70] sm:$0xff]  ;;  %v1973_v42 = vld [vmem:[#allocation6 + $0x78] sm:$0xff] }
  0x49   : > { %v264_v32 = vld [vmem:[%s259_s13] sm:$0xff]  ;;  %1472 = vmatprep.subr.bf16.mxu0 %v1770_v4  ;;  %1400 = vmatprep.subr.bf16.mxu1 %v1770_v4  ;;  %v320_v34 = vand.u32 4294901760, %v1936_v22  ;;  %v323_v35 = vand.u32 4294901760, %v1944_v26  ;;  %v326_v40 = vand.u32 4294901760, %v1946_v27  ;;  %v1983_v45 = vpack.c.bf16 %v305_v13, %v302_v12  ;;  %s1074_s24 = sshll.u32 %s250_s22, 3  ;;  %s1082_s6 = sshll.u32 %s1755_s18, 7 }
  0x4a   : > { %268 = vperm.xlu0 %1633, %v264_v32   ;;  %v1963_v37 = vsub.f32 %v279_v14, %v308_v29  ;;  %v1965_v38 = vsub.f32 %v280_v15, %v311_v30  ;;  %v1968_v39 = vsub.f32 %v1932_v20, %v314_v31  ;;  %v1976_v43 = vsub.f32 %v1934_v21, %v317_v33  ;;  %s252_s7 = scalar_lea.vmem [#allocation7], %s1074_s24  ;;  %s2235_s29 = scalar_lea.hbm %s2286_s4, %s1082_s6 }
  0x4b   : > { %v1979_v44 = vsub.f32 %v1936_v22, %v320_v34  ;;  %v1986_v46 = vsub.f32 %v1944_v26, %v323_v35  ;;  %v329_v47 = vand.u32 4294901760, %v1961_v36  ;;  %v1992_v48 = vsub.f32 %v1946_v27, %v326_v40  ;;  %s954_s9 = sshll.u32 %s252_s7, 4  ;;  %s940_s30 = scalar_lea.sflag [#allocation4], %s250_s22  ;;  %s2237_s9 = int_to_ptr.vmem [resolvable:$true] %s954_s9 }
  0x4c   : > { %1474 = vmatpush3.bf16.msra.mxu0 %v1938_v23  ;;  %1402 = vmatpush3.bf16.msra.mxu1 %v1938_v23  ;;  %v332_v49 = vand.u32 4294901760, %v1971_v41  ;;  %v335_v50 = vand.u32 4294901760, %v1973_v42  ;;  %vm1771_vm0 = vmmov 0   ;;  %v1772_v52 = vmov 0.0   ;;  %s1677_s8 = scalar_lea.vmem %s2237_s9, 128  ;;  %p2293_p10 = scmp.ne.s32.totalorder %s2288_s25, 0 }
  0x4d   : > { %1475 = vmatprep.subr.bf16.mxu0 %v1770_v4  ;;  %1403 = vmatprep.subr.bf16.mxu1 %v1770_v4  ;;  %v1999_v51 = vsub.f32 %v1961_v36, %v329_v47  ;;  %v383_v53 = vand.u32 4294901760, %v1926_v17  ;;  %v390_v54 = vand.u32 4294901760, %v1928_v18  ;;  %v2007_v55 = vpack.c.bf16 %v311_v30, %v308_v29  ;;  %p1678_p8 = scmp.ne.s32.totalorder %s2237_s9, %s1677_s8  ;;  %s1774_s18 = smov [#allocation7]  }
  0x4e   : > { %1324 = vmatprep.mubr.msk.f32.mxu0 %vm1771_vm0, %v1772_v52  ;;  %1219 = vmatprep.mubr.msk.f32.mxu1 %vm1771_vm0, %v1772_v52  ;;  %v2012_v56 = vsub.f32 %v1971_v41, %v332_v49  ;;  %v2017_v57 = vsub.f32 %v1973_v42, %v335_v50  ;;  %v397_v61 = vand.u32 4294901760, %v1930_v19  ;;  %v404_v62 = vand.u32 4294901760, %v1940_v24  ;;  %s1681_s10 = sshll.u32 %s1774_s18, 4  ;;  %s1682_s10 = int_to_ptr.vmem [resolvable:$false] %s1681_s10 }
  0x4f   : > { %v2021_v58 = vpack.c.bf16 %v390_v54, %v383_v53  ;;  %v384_v59 = vsub.f32 %v1926_v17, %v383_v53  ;;  %v391_v60 = vsub.f32 %v1928_v18, %v390_v54  ;;  %v2035_v5 = vpack.c.bf16 %v317_v33, %v314_v31  ;;  %p1679_p11 = pnand %p1678_p8, %p2293_p10  ;;  %s1683_s13 = scalar_lea.vmem %s1682_s10, 256 }
  0x50   : > { %1477 = vmatpush3.bf16.msra.mxu0 %v1983_v45  ;;  %1405 = vmatpush3.bf16.msra.mxu1 %v1983_v45  ;;  %v2029_v1 = vpack.c.bf16 %v404_v62, %v397_v61  ;;  %v398_v2 = vsub.f32 %v1930_v19, %v397_v61  ;;  %v405_v3 = vsub.f32 %v1940_v24, %v404_v62  ;;  %v411_v9 = vand.u32 4294901760, %v1942_v25  ;;  %p1684_p1 = scmp.lt.s32.totalorder %s2237_s9, %s1682_s10  ;;  %p1685_p2 = scmp.lt.s32.totalorder %s1683_s13, %s1677_s8 }
  0x51   : > { %1478 = vmatprep.subr.bf16.mxu0 %v1770_v4  ;;  %1406 = vmatprep.subr.bf16.mxu1 %v1770_v4  ;;  %v385_v63 = vand.u32 4294901760, %v384_v59  ;;  %v392_v0 = vand.u32 4294901760, %v391_v60  ;;  %v418_v10 = vand.u32 4294901760, %v1953_v28  ;;  %v2051_v15 = vpack.c.bf16 %v323_v35, %v320_v34  ;;  %p1680_p13 = pneg %p1679_p11 }
  0x52   : > { %v399_v7 = vand.u32 4294901760, %v398_v2  ;;  %v406_v8 = vand.u32 4294901760, %v405_v3  ;;  %v412_v13 = vsub.f32 %v1942_v25, %v411_v9  ;;  %v425_v22 = vand.u32 4294901760, %v1963_v37  ;;  %p1686_p3 = por %p1685_p2, %p1684_p1 }
  0x53   : > { %v2037_v6 = vpack.c.bf16 %v392_v0, %v385_v63  ;;  %v2045_v12 = vpack.c.bf16 %v418_v10, %v411_v9  ;;  %v419_v14 = vsub.f32 %v1953_v28, %v418_v10  ;;  %v432_v26 = vand.u32 4294901760, %v1965_v38 }
  0x54   : > { %1480 = vmatpush3.bf16.msra.mxu0 %v2007_v55  ;;  %1408 = vmatpush3.bf16.msra.mxu1 %v2007_v55  ;;  %v2043_v11 = vpack.c.bf16 %v406_v8, %v399_v7  ;;  %v413_v20 = vand.u32 4294901760, %v412_v13  ;;  %v426_v31 = vsub.f32 %v1963_v37, %v425_v22  ;;  %v2067_v33 = vpack.c.bf16 %v329_v47, %v326_v40  ;;  %p1687_p5 = pnand %p1686_p3, %p1680_p13 }
  0x55   : > { %1481 = vmatprep.subr.bf16.mxu0 %v1770_v4  ;;  %1409 = vmatprep.subr.bf16.mxu1 %v1770_v4  ;;  %v420_v21 = vand.u32 4294901760, %v419_v14  ;;  %v2059_v30 = vpack.c.bf16 %v432_v26, %v425_v22  ;;  %v433_v32 = vsub.f32 %v1965_v38, %v432_v26  ;;  %v439_v36 = vand.u32 4294901760, %v1968_v39 }
  0x56   : > { %v427_v34 = vand.u32 4294901760, %v426_v31  ;;  %v446_v53 = vand.u32 4294901760, %v1976_v43  ;;  %v2085_v40 = vpack.c.bf16 %v335_v50, %v332_v49  ;;  %v453_v62 = vand.u32 4294901760, %v1979_v44 }
  0x57   : > { %v2057_v29 = vpack.c.bf16 %v420_v21, %v413_v20  ;;  %v434_v35 = vand.u32 4294901760, %v433_v32  ;;  %v440_v60 = vsub.f32 %v1968_v39, %v439_v36  ;;  %v460_v63 = vand.u32 4294901760, %v1986_v46 }
  0x58   : > { %1483 = vmatpush3.bf16.msra.mxu0 %v2035_v5  ;;  %1411 = vmatpush3.bf16.msra.mxu1 %v2035_v5  ;;  %v2075_v59 = vpack.c.bf16 %v446_v53, %v439_v36  ;;  %v447_v27 = vsub.f32 %v1976_v43, %v446_v53  ;;  %v454_v41 = vsub.f32 %v1979_v44, %v453_v62  ;;  %v467_v3 = vand.u32 4294901760, %v1992_v48 }
  0x59   : > { %1484 = vmatprep.subr.bf16.mxu0 %v1770_v4  ;;  %1412 = vmatprep.subr.bf16.mxu1 %v1770_v4  ;;  %v2073_v54 = vpack.c.bf16 %v434_v35, %v427_v34  ;;  %v441_v47 = vand.u32 4294901760, %v440_v60  ;;  %v2093_v2 = vpack.c.bf16 %v460_v63, %v453_v62  ;;  %v461_v42 = vsub.f32 %v1986_v46, %v460_v63 }
  0x5a   : > { %v448_v61 = vand.u32 4294901760, %v447_v27  ;;  %v455_v49 = vand.u32 4294901760, %v454_v41  ;;  %v474_v7 = vand.u32 4294901760, %v1999_v51  ;;  %v468_v10 = vsub.f32 %v1992_v48, %v467_v3 }
  0x5b   : > { %v462_v50 = vand.u32 4294901760, %v461_v42  ;;  %v481_v21 = vand.u32 4294901760, %v2012_v56  ;;  %v488_v22 = vand.u32 4294901760, %v2017_v57  ;;  %v1446_v60 = vpack.c.bf16 %v1928_v18, %v1926_v17 }
  0x5c   : > { %1486 = vmatpush3.bf16.msra.mxu0 %v2051_v15  ;;  %1414 = vmatpush3.bf16.msra.mxu1 %v2051_v15  ;;  %v2091_v0 = vpack.c.bf16 %v448_v61, %v441_v47  ;;  %v1512_v9 = vpack.c.bf16 %v474_v7, %v467_v3  ;;  %v475_v13 = vsub.f32 %v1999_v51, %v474_v7  ;;  %v469_v14 = vand.u32 4294901760, %v468_v10 }
  0x5d   : > { %1487 = vmatprep.subr.bf16.mxu0 %v1770_v4  ;;  %1415 = vmatprep.subr.bf16.mxu1 %v1770_v4  ;;  %v1437_v8 = vpack.c.bf16 %v462_v50, %v455_v49  ;;  %v1515_v31 = vpack.c.bf16 %v488_v22, %v481_v21  ;;  %v482_v32 = vsub.f32 %v2012_v56, %v481_v21  ;;  %v265_v18 = vlaneseq }
  0x5e   : > { %v476_v20 = vand.u32 4294901760, %v475_v13  ;;  %v489_v34 = vsub.f32 %v2017_v57, %v488_v22  ;;  %v1449_v27 = vpack.c.bf16 %v1940_v24, %v1930_v19  ;;  %v1452_v47 = vpack.c.bf16 %v1953_v28, %v1942_v25 }
  0x5f   : > { %v483_v35 = vand.u32 4294901760, %v482_v32  ;;  %v1455_v61 = vpack.c.bf16 %v1965_v38, %v1963_v37  ;;  %v1458_v62 = vpack.c.bf16 %v1976_v43, %v1968_v39  ;;  %v1461_v63 = vpack.c.bf16 %v1986_v46, %v1979_v44 }
  0x60   : > { %1489 = vmatpush3.bf16.msra.mxu0 %v2067_v33  ;;  %1417 = vmatpush3.bf16.msra.mxu1 %v2067_v33  ;;  %v1440_v26 = vpack.c.bf16 %v476_v20, %v469_v14  ;;  %v490_v36 = vand.u32 4294901760, %v489_v34  ;;  %v1464_v41 = vpack.c.bf16 %v1999_v51, %v1992_v48  ;;  %v1467_v17 = vpack.c.bf16 %v2017_v57, %v2012_v56 }
  0x61   : > { %1490 = vmatprep.subr.bf16.mxu0 %v1770_v4  ;;  %1418 = vmatprep.subr.bf16.mxu1 %v1770_v4  ;;  %v2125_v42 = vand.u32 127, %v265_v18  ;;  %v931_v25 = vstv %s930_s21 }
  0x62   : > { %v1443_v53 = vpack.c.bf16 %v490_v36, %v483_v35 }
  0x64   : > { %1492 = vmatpush3.bf16.msra.mxu0 %v2085_v40  ;;  %1420 = vmatpush3.bf16.msra.mxu1 %v2085_v40 }
  0x65   : > { %1493 = vmatprep.subr.bf16.mxu0 %v1770_v4  ;;  %1421 = vmatprep.subr.bf16.mxu1 %v1770_v4 }
  0xc9   : > { %v2127_v49 = vpop.permute.xlu0 %268 }
  0xca   : > { %vm270_vm1 = vcmp.eq.s32.totalorder %v2125_v42, %v2127_v49 }
  0xcb   : > { %v1076_v50 = vsel %vm270_vm1, 1.0, %v1772_v52 }
  0xcc   : > { %v2135_v3 = vsub.f32 %v1076_v50, %v1076_v50 }
  0xce   : > { %v372_v7 = vand.u32 4294901760, %v2135_v3 }
  0xd0   : > { %1325 = vmatmul.mubr.f32.vlgmr.msra.gmra.mrb[0].mxu0 %v372_v7  ;;  %v373_v10 = vsub.f32 %v2135_v3, %v372_v7 }
  0xd1   : > { %1495 = vmatpush3.bf16.msra.mxu0 %v2021_v58  ;;  %1359 = vmatprep.mubr.msk.f32.mxu0 %vm1771_vm0, %v1772_v52  ;;  %v1773_v58 = vmov 1.0  }
  0xd2   : > { %1496 = vmatprep.subr.bf16.mxu0 %v1770_v4  ;;  %v374_v13 = vand.u32 4294901760, %v373_v10 }
  0xd4   : > { %1220 = vmatmul.mubr.f32.vlgmr.msra.gmra.mrb[0].mxu1 %v374_v13 }
  0xd5   : > { %1423 = vmatpush3.bf16.msra.mxu1 %v2037_v6  ;;  %1498 = vmatpush3.bf16.msra.mxu0 %v2029_v1 }
  0xd6   : > { %1424 = vmatprep.subr.bf16.mxu1 %v1770_v4  ;;  %1499 = vmatprep.subr.bf16.mxu0 %v1770_v4 }
  0xd7   : > { %1254 = vmatprep.mubr.msk.f32.mxu1 %vm1771_vm0, %v1772_v52 }
  0xd9   : > { %1426 = vmatpush3.bf16.msra.mxu1 %v2043_v11  ;;  %1501 = vmatpush3.bf16.msra.mxu0 %v2045_v12 }
  0xda   : > { %1427 = vmatprep.subr.bf16.mxu1 %v1770_v4  ;;  %1502 = vmatprep.subr.bf16.mxu0 %v1770_v4 }
  0xdd   : > { %1429 = vmatpush3.bf16.msra.mxu1 %v2057_v29  ;;  %1504 = vmatpush3.bf16.msra.mxu0 %v2059_v30 }
  0xde   : > { %1430 = vmatprep.subr.bf16.mxu1 %v1770_v4  ;;  %1505 = vmatprep.subr.bf16.mxu0 %v1770_v4 }
  0xe1   : > { %1432 = vmatpush3.bf16.msra.mxu1 %v2073_v54  ;;  %1507 = vmatpush3.bf16.msra.mxu0 %v2075_v59 }
  0xe2   : > { %1433 = vmatprep.subr.bf16.mxu1 %v1770_v4  ;;  %1508 = vmatprep.subr.bf16.mxu0 %v1770_v4 }
  0xe5   : > { %1435 = vmatpush3.bf16.msra.mxu1 %v2091_v0  ;;  %1510 = vmatpush3.bf16.msra.mxu0 %v2093_v2 }
  0xe6   : > { %1436 = vmatprep.subr.bf16.mxu1 %v1770_v4  ;;  %1511 = vmatprep.subr.bf16.mxu0 %v1770_v4 }
  0xe9   : > { %1438 = vmatpush3.bf16.msra.mxu1 %v1437_v8  ;;  %1513 = vmatpush3.bf16.msra.mxu0 %v1512_v9 }
  0xea   : > { %1439 = vmatprep.subr.bf16.mxu1 %v1770_v4  ;;  %1514 = vmatprep.subr.bf16.mxu0 %v1770_v4 }
  0xed   : > { %1441 = vmatpush3.bf16.msra.mxu1 %v1440_v26  ;;  %1516 = vmatpush3.bf16.msra.mxu0 %v1515_v31 }
  0xee   : > { %1442 = vmatprep.subr.bf16.mxu1 %v1770_v4  ;;  %1517 = vmatprep.subr.bf16.mxu0 %v1770_v4 }
  0xf0   : > { %1360 = vmatmul.mubr.msk.f32.vlgmr.msra.gmra.mrb[0].mxu0 %vm270_vm1, %v1773_v58 }
  0xf1   : > { %1444 = vmatpush3.bf16.msra.mxu1 %v1443_v53  ;;  %1519 = vmatpush3.bf16.msra.mxu0 %v1924_v16 }
  0xf2   : > { %1445 = vmatprep.subr.bf16.mxu1 %v1770_v4  ;;  %1520 = vmatprep.subr.bf16.mxu0 %v1770_v4 }
  0xf3   : > { %1394 = vmatprep.mubr.msk.f32.mxu0 %vm1771_vm0, %v1772_v52 }
  0xf4   : > { %1255 = vmatmul.mubr.msk.f32.vlgmr.msra.gmra.mrb[0].mxu1 %vm270_vm1, %v1773_v58 }
  0xf5   : > { %1447 = vmatpush3.bf16.msra.mxu1 %v1446_v60  ;;  %1522 = vmatpush3.bf16.msra.mxu0 %v1938_v23  ;;  %v935_v23 = vstv %s1080_s14 }
  0xf6   : > { %1448 = vmatprep.subr.bf16.mxu1 %v1770_v4  ;;  %1523 = vmatprep.subr.bf16.mxu0 %v1770_v4 }
  0xf7   : > { %1289 = vmatprep.mubr.msk.f32.mxu1 %vm1771_vm0, %v1772_v52 }
  0xf9   : > { %1450 = vmatpush3.bf16.msra.mxu1 %v1449_v27  ;;  %1525 = vmatpush3.bf16.msra.mxu0 %v1983_v45 }
  0xfa   : > { %1451 = vmatprep.subr.bf16.mxu1 %v1770_v4  ;;  %1526 = vmatprep.subr.bf16.mxu0 %v1770_v4 }
  0xfd   : > { %1453 = vmatpush3.bf16.msra.mxu1 %v1452_v47  ;;  %1528 = vmatpush3.bf16.msra.mxu0 %v2007_v55 }
  0xfe   : > { %1454 = vmatprep.subr.bf16.mxu1 %v1770_v4  ;;  %1529 = vmatprep.subr.bf16.mxu0 %v1770_v4 }
 0x101   : > { %1456 = vmatpush3.bf16.msra.mxu1 %v1455_v61  ;;  %1531 = vmatpush3.bf16.msra.mxu0 %v2035_v5 }
 0x102   : > { %1457 = vmatprep.subr.bf16.mxu1 %v1770_v4  ;;  %1532 = vmatprep.subr.bf16.mxu0 %v1770_v4 }
 0x105   : > { %1459 = vmatpush3.bf16.msra.mxu1 %v1458_v62  ;;  %1534 = vmatpush3.bf16.msra.mxu0 %v2051_v15 }
 0x106   : > { %1460 = vmatprep.subr.bf16.mxu1 %v1770_v4  ;;  %1535 = vmatprep.subr.bf16.mxu0 %v1770_v4 }
 0x109   : > { %1462 = vmatpush3.bf16.msra.mxu1 %v1461_v63  ;;  %1537 = vmatpush3.bf16.msra.mxu0 %v2067_v33 }
 0x10a   : > { %1463 = vmatprep.subr.bf16.mxu1 %v1770_v4  ;;  %1538 = vmatprep.subr.bf16.mxu0 %v1770_v4 }
 0x10d   : > { %1465 = vmatpush3.bf16.msra.mxu1 %v1464_v41  ;;  %1540 = vmatpush3.bf16.msra.mxu0 %v2085_v40 }
 0x10e   : > { %1466 = vmatprep.subr.bf16.mxu1 %v1770_v4  ;;  %v934_v4 = vld [vmem:[%s2285_s3] sm:$0xff] }
 0x10f   : > { %v936_v37 = vmul.f32 %v935_v23, %v934_v4 }
 0x110   : > { %1395 = vmatmul.mubr.msk.f32.vlgmr.msra.gmra.mrb[0].mxu0 %vm270_vm1, %v1773_v58 }
 0x111   : > { %1468 = vmatpush3.bf16.msra.mxu1 %v1467_v17 }
 0x114   : > { %1290 = vmatmul.mubr.f32.vlgmr.msra.gmra.mrb[0].mxu1 %v2135_v3 }
 0x1e3   : > { %v926_v16 = vpop.f32.mrb[0].mxu0 }
 0x1e4   : > { %v1396_v19 = vpop.f32.mrb[1].mxu0 }
 0x1e7   : > { %v631_v24 = vpop.f32.mrb[0].mxu1 }
 0x1e8   : > { %v1541_v28 = vadd.f32 %v926_v16, %v631_v24  ;;  %v1291_v38 = vpop.f32.mrb[1].mxu1 }
 0x1ea   : > { %v932_v39 = vmul.f32 %v1541_v28, %v931_v25 }
 0x1ec   : > { %v937_v43 = vadd.f32 %v936_v37, %v932_v39 }
 0x1ee   : > { %938 = vst [vmem:[%s252_s7] sm:$0xff] %v937_v43 }
 0x1ef   : > { %1690 = shalt.err (!%p1687_p5)
}
 0x1f0   : > { %s1691_s14 = scalar_lea.hbm %s2235_s29, 128  ;;  %s1695_s24 = scalar_lea.hbm %s2286_s4, 256 }
 0x1f1   : > { %p1692_p6 = scmp.ne.s32.totalorder %s2235_s29, %s1691_s14  ;;  %p1696_p12 = scmp.lt.u32.totalorder %s2235_s29, %s2286_s4 }
 0x1f2   : > { %p1697_p0 = scmp.lt.u32.totalorder %s1695_s24, %s1691_s14  ;;  %p1699_p8 = scmp.lt.u32.totalorder %s1691_s14, %s2235_s29 }
 0x1f3   : > { %p1693_p7 = pnand %p1692_p6, %p2293_p10 }
 0x1f4   : > { %p1698_p4 = por %p1697_p0, %p1696_p12 }
 0x1f5   : > { %p1694_p9 = pneg %p1693_p7 }
 0x1f6   : > { %p1700_p11 = por %p1699_p8, %p1698_p4 }
 0x1f8   : > { %p1701_p13 = pnand %p1700_p11, %p1694_p9 }
 0x1fa   : > { %1704 = shalt.err (!%p1701_p13)
}
 0x1fb   : > { %1558 = dma.vmem_to_hbm [thread:$0]  (%p2293_p10), %s2237_s9, 128, %s2235_s29, %s940_s30  }
 0x1fc PF: > { %p1575_p1 = scmp.ge.s32.totalorder %s1763_s20, 2  ;;  %s966_s6 = sand.u32 1, %s1743_s15  }
 0x1fd   : > { %p2294_p2 = scmp.ne.s32.totalorder %s2289_s27, 0  ;;  %s967_s7 = scalar_lea.sflag [#allocation4], %s966_s6 }
 0x1ff   : > { %p1568_p3 = pnand %p1575_p1, %p2294_p2 }
 0x201   : > { %1738 = dma.done.wait (!%p1568_p3), %s967_s7, 128  }
 0x202   : > { %1740 = vsyncadd (!%p1568_p3), %s967_s7, 4294967168  ;;  %s19_s20 = sadd.s32 1, %s1763_s20   ;;  %s2295_s15 = smov %s1747_s16 }
 0x203   : > { %p16_p5 = scmp.ge.s32.totalorder %s19_s20, 4   ;;  %s2296_s16 = smov %s1751_s17 }
 0x204   : > { %s2297_s17 = smov %s1853_s28  ;;  %s2298_s18 = smov %s1759_s19 }
 0x205   : > { %s2299_s19 = smov %s2301_s23  ;;  %18 = sbr.rel (!%p16_p5) target bundleno = 6 (0x6), region = 84 }
 0x20c   :  { %972 = vsyncpa [#allocation3], 1 }
 0x20d   :  { %974 = vsyncpa [#allocation3 + $0x1], 1 }
 0x20e   :  { %975 = vsyncpa [#allocation4], 1 }
 0x20f   :  { %977 = vsyncpa [#allocation4 + $0x1], 1 }
 0x210   :  { %978 = vsyncpa [#allocation5], 1 }
 0x211   :  { %980 = vsyncpa [#allocation5 + $0x1], 1 }

</bundles_post_ra>
